<compile_context>
chip_gen: v5e
topology: v5e:2x2
jax: 0.10.0
libtpu: 0.0.40
codegen_flags: <defaults>
</compile_context>

<pallas_src>
import functools

import jax
import jax.numpy as jnp
from jax.experimental import pallas as pl
from jax.experimental.pallas import tpu as pltpu

LANE = 128


def _round_up(x, m):
    return ((x + m - 1) // m) * m


def _num_tensorcores():
    """2 on v7x-class chips (dual TensorCore per chip), else 1. Best effort."""
    try:
        kind = jax.devices()[0].device_kind.lower()
    except Exception:
        return 1
    return 2 if ("v7" in kind or "7x" in kind) else 1


def gcn_kernel(a_ref, xw_ref, dinv_ref, b_ref, o_ref, acc_ref, *, tk):
    k = pl.program_id(1)

    @pl.when(k == 0)
    def _():
        acc_ref[...] = jnp.zeros_like(acc_ref)

    # Partial neighbor sum: acc += A[i-tile, k-tile] @ XW[k-tile].
    # XW is fully VMEM-resident; slice the k-tile out of it (no HBM re-stream).
    start = pl.multiple_of(k * tk, tk)
    acc_ref[...] += jnp.dot(a_ref[...], xw_ref[pl.ds(start, tk), :],
                            preferred_element_type=jnp.float32)

    @pl.when(k == pl.num_programs(1) - 1)
    def _():
        # Epilogue (once per row tile): f32 mean scale, bias, ReLU, store.
        z = acc_ref[...] * dinv_ref[...] + b_ref[...]
        o_ref[...] = jnp.maximum(z, 0.0).astype(o_ref.dtype)


def gcn_forward(adj, deg_inv, x, weight, bias, *,
                out_dtype=jnp.bfloat16, max_tm=512, max_tk=2048):
    """adj:     (N, N) 0/1 in-adjacency, adj[v, u] = 1 iff edge u -> v
                (bf16 preferred; exactly representable). May be pre-padded.
       deg_inv: (N,) f32, 1 / in_degree(v)  (graph guarantees in_degree >= 1)
       x:       (N, in_feats) node features
       weight:  (out_feats, in_feats)  torch nn.Linear layout
       bias:    (out_feats,)
    Computes ReLU(deg_inv * (adj @ (x @ weight.T)) + bias)
           == mean-aggregation over in-neighbors, then Linear + ReLU.
    """
    n = x.shape[0]
    out_feats, in_feats = weight.shape
    o_pad = _round_up(out_feats, LANE)          # lane-dense output (keep at 128)

    # --- tile selection -----------------------------------------------------
    tk = min(max_tk, _round_up(n, LANE))        # big K tile for the A stream
    n_pad = _round_up(n, tk)
    tm = next(t for t in (512, 256, 128, 64, 32, 16, 8)
              if t <= max_tm and tk % t == 0)   # tm | tk  =>  tm | n_pad
    # v7x: 2 TensorCores -> keep at least 2 tiles on the "parallel" row axis.
    if _num_tensorcores() > 1 and n_pad // tm < 2 and tm >= 16:
        tm //= 2

    # --- small operands: precompute XW with plain XLA, pad lane-dense --------
    xw = x.astype(jnp.float32) @ weight.astype(jnp.float32).T
    xw_p = jnp.zeros((n_pad, o_pad), jnp.bfloat16).at[:n, :out_feats].set(
        xw.astype(jnp.bfloat16))
    b_p = jnp.zeros((1, o_pad), jnp.float32).at[0, :out_feats].set(
        bias.astype(jnp.float32))
    dinv_p = jnp.zeros((n_pad, 1), jnp.float32).at[:n, 0].set(
        deg_inv.astype(jnp.float32))

    # --- adjacency: avoid an extra pad/cast pass over the (N,N) operand ------
    if adj.shape == (n_pad, n_pad) and adj.dtype == jnp.bfloat16:
        a_p = adj                                   # already streamable as-is
    elif adj.shape == (n, n) and n_pad == n:
        a_p = adj.astype(jnp.bfloat16)              # no pad needed
    else:
        a_p = jnp.zeros((n_pad, n_pad), jnp.bfloat16).at[:n, :n].set(
            adj[:n, :n].astype(jnp.bfloat16))

    grid = (n_pad // tm, n_pad // tk)

    # --- right-sized scoped-VMEM budget from the actual footprint ------------
    out_bytes = jnp.dtype(out_dtype).itemsize
    footprint = (2 * tm * tk * 2                 # A tile, double-buffered bf16
                 + 2 * n_pad * o_pad * 2         # resident XW (bf16)
                 + 2 * (tm * 4 + o_pad * 4)      # deg_inv + bias blocks
                 + 2 * tm * o_pad * out_bytes    # output tile
                 + tm * o_pad * 4)               # f32 accumulator scratch
    vmem_limit = int(min(max(2 * footprint, 16 << 20), 64 << 20))

    out = pl.pallas_call(
        functools.partial(gcn_kernel, tk=tk),
        out_shape=jax.ShapeDtypeStruct((n_pad, o_pad), out_dtype),
        grid_spec=pltpu.PrefetchScalarGridSpec(
            num_scalar_prefetch=0,
            grid=grid,
            in_specs=[
                # A tile, streamed from HBM (dominant traffic).
                # TODO(synk): if v7x profiling shows exposed DMA here, add
                # pipeline_mode=pl.Buffered(3).
                pl.BlockSpec((tm, tk), lambda i, k: (i, k)),
                # XW held fully resident in VMEM (DMAed once, sliced in-kernel).
                pl.BlockSpec((n_pad, o_pad), lambda i, k: (0, 0)),
                # f32 1/in_degree per row tile.
                pl.BlockSpec((tm, 1), lambda i, k: (i, 0)),
                # bias, resident.
                pl.BlockSpec((1, o_pad), lambda i, k: (0, 0)),
            ],
            out_specs=pl.BlockSpec((tm, o_pad), lambda i, k: (i, 0)),
            scratch_shapes=[pltpu.VMEM((tm, o_pad), jnp.float32)],
        ),
        compiler_params=pltpu.CompilerParams(
            dimension_semantics=("parallel", "arbitrary"),
            vmem_limit_bytes=vmem_limit,
        ),
    )(a_p, xw_p, dinv_p, b_p)

    return out[:n, :out_feats]


def build_graph(key, n):
    """Deterministic random directed graph where every node has >= 1 in-edge.
    Returns (adj_bf16, deg_inv_f32): exact 0/1 in-adjacency (bf16, exactly
    representable) and f32 inverse in-degree."""
    rand = jax.random.uniform(key, (n, n)) < 0.3
    rand = jnp.logical_and(rand, ~jnp.eye(n, dtype=bool))        # no self loops
    ring = jnp.roll(jnp.eye(n, dtype=bool), shift=-1, axis=1)    # (v-1) -> v
    adj = jnp.logical_or(rand, ring).astype(jnp.float32)
    deg_inv = 1.0 / jnp.sum(adj, axis=1)                         # in_degree >= 1
    return adj.astype(jnp.bfloat16), deg_inv.astype(jnp.float32)


def _check_case(key, n, in_feats, out_feats, **kw):
    k_g, k_x, k_w, k_b = jax.random.split(key, 4)
    adj_bf16, deg_inv = build_graph(k_g, n)
    x = jax.random.normal(k_x, (n, in_feats), dtype=jnp.float32)
    weight = jax.random.normal(k_w, (out_feats, in_feats), dtype=jnp.float32) * 0.1
    bias = jax.random.normal(k_b, (out_feats,), dtype=jnp.float32) * 0.1

    out = gcn_forward(adj_bf16, deg_inv, x, weight, bias, **kw)
    out = jax.block_until_ready(out).astype(jnp.float32)

    a_norm = adj_bf16.astype(jnp.float32) * deg_inv[:, None]
    ref = jnp.maximum((a_norm @ x) @ weight.T + bias, 0.0)
    assert out.shape == (n, out_feats), out.shape
    # XW bf16 cast + bf16 output store lose ~3 decimal digits vs the f32 ref.
    assert jnp.allclose(out, ref, atol=2e-2, rtol=2e-2), \
        float(jnp.max(jnp.abs(out - ref)))


if __name__ == "__main__":
    key = jax.random.PRNGKey(0)
    k1, k2, k3 = jax.random.split(key, 3)

    # Toy shape matching the module's usage (single K step, padded to 128).
    _check_case(k1, n=16, in_feats=8, out_feats=32)
    # Larger case: big tiles (tm=512, tk=1024), padding 1000 -> 1024.
    _check_case(k2, n=1000, in_feats=8, out_feats=32)
    # Same graph, forced small tiles: exercises the multi-step K reduction,
    # accumulator init/epilogue and the in-kernel dynamic slice of resident XW.
    _check_case(k3, n=1000, in_feats=8, out_feats=32, max_tm=256, max_tk=256)

    print("KERNEL_OK")
</pallas_src>

<mosaic_0001>
module attributes {stable_mosaic.version = 11 : i64} {
  func.func @gcn_kernel(%arg0: i32, %arg1: i32, %arg2: memref<128x128xbf16, #tpu.memory_space<vmem>>, %arg3: memref<128x128xbf16, #tpu.memory_space<vmem>>, %arg4: memref<128x1xf32, #tpu.memory_space<vmem>>, %arg5: memref<1x128xf32, #tpu.memory_space<vmem>>, %arg6: memref<128x128xbf16, #tpu.memory_space<vmem>>, %arg7: memref<128x128xf32, #tpu.memory_space<vmem>>) attributes {dimension_semantics = [#tpu.dimension_semantics<parallel>, #tpu.dimension_semantics<arbitrary>], iteration_bounds = array<i64: 1, 1>, scalar_prefetch = 0 : i64, scratch_operands = 1 : i64, tpu.core_type = #tpu.core_type<tc>, window_params = [{transform_indices = @transform_0, window_bounds = array<i64: 128, 128>}, {pipeline_mode = #tpu.pipeline_mode<synchronous>, transform_indices = @transform_1, window_bounds = array<i64: 128, 128>}, {transform_indices = @transform_2, window_bounds = array<i64: 128, 1>}, {pipeline_mode = #tpu.pipeline_mode<synchronous>, transform_indices = @transform_3, window_bounds = array<i64: 1, 128>}, {transform_indices = @transform_4, window_bounds = array<i64: 128, 128>}]} {
    %c0_i32 = arith.constant 0 : i32
    %0 = arith.cmpi eq, %arg1, %c0_i32 : i32
    %1 = arith.extui %0 : i1 to i32
    %c0_i32_0 = arith.constant 0 : i32
    %2 = arith.cmpi ne, %1, %c0_i32_0 : i32
    scf.if %2 {
      %cst_9 = arith.constant 0.000000e+00 : f32
      %15 = vector.broadcast %cst_9 : f32 to vector<128x128xf32>
      %c0_10 = arith.constant 0 : index
      %c0_11 = arith.constant 0 : index
      %16 = vector.load %arg7[%c0_10, %c0_11] : memref<128x128xf32, #tpu.memory_space<vmem>>, vector<128x128xf32>
      tpu.vector_store %arg7[%c0_10, %c0_11], %15 {strides = array<i32>} : memref<128x128xf32, #tpu.memory_space<vmem>>, vector<128x128xf32>,
    } else {
    }
    %c128_i32 = arith.constant 128 : i32
    %3 = arith.muli %arg1, %c128_i32 : i32
    %4 = tpu.assume_multiple %3, 128 : i32
    %c0 = arith.constant 0 : index
    %c0_1 = arith.constant 0 : index
    %5 = vector.load %arg7[%c0, %c0_1] : memref<128x128xf32, #tpu.memory_space<vmem>>, vector<128x128xf32>
    %c0_2 = arith.constant 0 : index
    %c0_3 = arith.constant 0 : index
    %6 = vector.load %arg2[%c0_2, %c0_3] : memref<128x128xbf16, #tpu.memory_space<vmem>>, vector<128x128xbf16>
    %7 = arith.index_cast %4 : i32 to index
    %c0_4 = arith.constant 0 : index
    %8 = vector.load %arg3[%7, %c0_4] : memref<128x128xbf16, #tpu.memory_space<vmem>>, vector<128x128xbf16>
    %cst = arith.constant dense<0.000000e+00> : vector<128x128xf32>
    %9 = tpu.matmul %6, %8, %cst {dimension_numbers = #tpu.dot_dimension_numbers<[1], [0], [0], [1], [0, 0, 1, 1], [], []>} : vector<128x128xbf16>, vector<128x128xbf16>, vector<128x128xf32> -> vector<128x128xf32>
    %10 = arith.addf %5, %9 : vector<128x128xf32>
    %c0_5 = arith.constant 0 : index
    %c0_6 = arith.constant 0 : index
    %11 = vector.load %arg7[%c0_5, %c0_6] : memref<128x128xf32, #tpu.memory_space<vmem>>, vector<128x128xf32>
    tpu.vector_store %arg7[%c0_5, %c0_6], %10 {strides = array<i32>} : memref<128x128xf32, #tpu.memory_space<vmem>>, vector<128x128xf32>,
    %c0_i32_7 = arith.constant 0 : i32
    %12 = arith.cmpi eq, %arg1, %c0_i32_7 : i32
    %13 = arith.extui %12 : i1 to i32
    %c0_i32_8 = arith.constant 0 : i32
    %14 = arith.cmpi ne, %13, %c0_i32_8 : i32
    scf.if %14 {
      %c0_9 = arith.constant 0 : index
      %c0_10 = arith.constant 0 : index
      %15 = vector.load %arg7[%c0_9, %c0_10] : memref<128x128xf32, #tpu.memory_space<vmem>>, vector<128x128xf32>
      %c0_11 = arith.constant 0 : index
      %c0_12 = arith.constant 0 : index
      %16 = vector.load %arg4[%c0_11, %c0_12] : memref<128x1xf32, #tpu.memory_space<vmem>>, vector<128x1xf32>
      %17 = vector.broadcast %16 : vector<128x1xf32> to vector<128x128xf32>
      %18 = arith.mulf %15, %17 : vector<128x128xf32>
      %c0_13 = arith.constant 0 : index
      %c0_14 = arith.constant 0 : index
      %19 = vector.load %arg5[%c0_13, %c0_14] : memref<1x128xf32, #tpu.memory_space<vmem>>, vector<1x128xf32>
      %20 = vector.broadcast %19 : vector<1x128xf32> to vector<128x128xf32>
      %21 = arith.addf %18, %20 : vector<128x128xf32>
      %cst_15 = arith.constant 0.000000e+00 : f32
      %22 = vector.broadcast %cst_15 : f32 to vector<128x128xf32>
      %23 = arith.maximumf %21, %22 : vector<128x128xf32>
      %24 = arith.truncf %23 : vector<128x128xf32> to vector<128x128xbf16>
      %c0_16 = arith.constant 0 : index
      %c0_17 = arith.constant 0 : index
      %25 = vector.load %arg6[%c0_16, %c0_17] : memref<128x128xbf16, #tpu.memory_space<vmem>>, vector<128x128xbf16>
      tpu.vector_store %arg6[%c0_16, %c0_17], %24 {strides = array<i32>} : memref<128x128xbf16, #tpu.memory_space<vmem>>, vector<128x128xbf16>,
    } else {
    }
    return
  }
  func.func @transform_0(%arg0: i32, %arg1: i32) -> (i32, i32) {
    %c0_i32 = arith.constant 0 : i32
    return %arg0, %arg1 : i32, i32
  }
  func.func @transform_1(%arg0: i32, %arg1: i32) -> (i32, i32) {
    %c0_i32 = arith.constant 0 : i32
    %c0_i32_0 = arith.constant 0 : i32
    %c0_i32_1 = arith.constant 0 : i32
    return %c0_i32, %c0_i32_0 : i32, i32
  }
  func.func @transform_2(%arg0: i32, %arg1: i32) -> (i32, i32) {
    %c0_i32 = arith.constant 0 : i32
    %c0_i32_0 = arith.constant 0 : i32
    return %arg0, %c0_i32 : i32, i32
  }
  func.func @transform_3(%arg0: i32, %arg1: i32) -> (i32, i32) {
    %c0_i32 = arith.constant 0 : i32
    %c0_i32_0 = arith.constant 0 : i32
    %c0_i32_1 = arith.constant 0 : i32
    return %c0_i32, %c0_i32_0 : i32, i32
  }
  func.func @transform_4(%arg0: i32, %arg1: i32) -> (i32, i32) {
    %c0_i32 = arith.constant 0 : i32
    %c0_i32_0 = arith.constant 0 : i32
    return %arg0, %c0_i32 : i32, i32
  }
}

</mosaic_0001>

<bundles_post_ra>
// kernel: tpu_custom_call.1
= control target key start
LH: loop header
LB: loop body
LE: loop exit
PB: predicated region body
PF: predicated region fallthrough
CT: control target
= control target key end

     0   :  { %v672_v2 = vmov 0   ;;  %s821_s0 = inlined_call_operand.vmem [shape: bf16[128,128], index: 0, kind: input, shape index: {}]   ;;  %s822_s1 = inlined_call_operand.vmem [shape: bf16[128,128], index: 1, kind: input, shape index: {}]   ;;  %s823_s2 = inlined_call_operand.vmem [shape: f32[128,1], index: 2, kind: input, shape index: {}]   ;;  %s824_s3 = inlined_call_operand.vmem [shape: f32[1,128], index: 3, kind: input, shape index: {}]   ;;  %s825_s4 = inlined_call_operand.hbm [shape: bf16[128,128], index: 4, kind: output, shape index: {}]  }
   0x1   :  { %v287_v0 = vld [vmem:[%s823_s2] sm:$0xff]  ;;  %v566_v1 = vld [vmem:[%s822_s1 + $0x38] sm:$0xff]  ;;  %642 = vset.pattern.permute.xlu0 %v672_v2  ;;  %643 = vset.pattern.permute.xlu1 %v672_v2  ;;  %v289_v3 = vld [vmem:[%s823_s2 + $0x10] sm:$0xff] }
   0x2   :  { %305 = vperm.xlu0 %642, %v287_v0   ;;  %187 = vmatpush.bf16.msra.mxu0 %v566_v1  ;;  %v565_v4 = vld [vmem:[%s822_s1 + $0x30] sm:$0xff]  ;;  %v564_v5 = vld [vmem:[%s822_s1 + $0x28] sm:$0xff]  ;;  %v291_v6 = vld [vmem:[%s823_s2 + $0x20] sm:$0xff] }
   0x3   :  { %614 = vmatpush.bf16.msra.mxu1 %v566_v1  ;;  %615 = vmatpush.bf16.msra.mxu2 %v566_v1  ;;  %v288_v7 = vld [vmem:[%s823_s2 + $0x8] sm:$0xff] }
   0x4   :  { %616 = vmatpush.bf16.msra.mxu3 %v566_v1  ;;  %315 = vperm.xlu1 %643, %v289_v3  }
   0x5   :  { %644 = vset.pattern.permute.xlu2 %v672_v2 }
   0x6   :  { %188 = vmatpush.bf16.msra.mxu0 %v565_v4  ;;  %325 = vperm.xlu2 %644, %v291_v6  }
   0x7   :  { %617 = vmatpush.bf16.msra.mxu1 %v565_v4  ;;  %618 = vmatpush.bf16.msra.mxu2 %v565_v4 }
   0x8   :  { %619 = vmatpush.bf16.msra.mxu3 %v565_v4 }
   0x9   :  { %9 = vsyncpa [#allocation4], 0  ;;  %v290_v8 = vld [vmem:[%s823_s2 + $0x18] sm:$0xff]  ;;  %v563_v9 = vld [vmem:[%s822_s1 + $0x20] sm:$0xff]  ;;  %s473_s29 = sshll.u32 %s825_s4, 4  ;;  %s674_s30 = smov 64   ;;  %s474_s29 = int_to_ptr.hbm [resolvable:$true] %s473_s29 }
   0xa   :  { %310 = vperm.xlu0 %642, %v288_v7   ;;  %189 = vmatpush.bf16.msra.mxu0 %v564_v5  ;;  %v292_v10 = vld [vmem:[%s823_s2 + $0x28] sm:$0xff]  ;;  %v562_v11 = vld [vmem:[%s822_s1 + $0x18] sm:$0xff]  ;;  %v293_v12 = vld [vmem:[%s823_s2 + $0x30] sm:$0xff]  ;;  %s675_s5 = smov 4  }
   0xb   :  { %620 = vmatpush.bf16.msra.mxu1 %v564_v5  ;;  %621 = vmatpush.bf16.msra.mxu2 %v564_v5  ;;  %v294_v13 = vld [vmem:[%s823_s2 + $0x38] sm:$0xff]  ;;  %v561_v14 = vld [vmem:[%s822_s1 + $0x10] sm:$0xff]  ;;  %v295_v15 = vld [vmem:[%s823_s2 + $0x40] sm:$0xff] }
   0xc   :  { %622 = vmatpush.bf16.msra.mxu3 %v564_v5  ;;  %320 = vperm.xlu1 %643, %v290_v8   ;;  %v560_v16 = vld [vmem:[%s822_s1 + $0x8] sm:$0xff]  ;;  %v297_v18 = vld [vmem:[%s823_s2 + $0x50] sm:$0xff]  ;;  %v559_v19 = vld [vmem:[%s822_s1] sm:$0xff] }
   0xd   :  { %v296_v17 = vld [vmem:[%s823_s2 + $0x48] sm:$0xff]  ;;  %v551_v20 = vld [vmem:[%s821_s0] sm:$0xff]  ;;  %v298_v21 = vld [vmem:[%s823_s2 + $0x58] sm:$0xff] }
   0xe   :  { %190 = vmatpush.bf16.msra.mxu0 %v563_v9  ;;  %330 = vperm.xlu2 %644, %v292_v10   ;;  %v553_v22 = vld [vmem:[%s821_s0 + $0x10] sm:$0xff]  ;;  %v299_v23 = vld [vmem:[%s823_s2 + $0x60] sm:$0xff]  ;;  %v300_v26 = vld [vmem:[%s823_s2 + $0x68] sm:$0xff] }
   0xf   :  { %623 = vmatpush.bf16.msra.mxu1 %v563_v9  ;;  %624 = vmatpush.bf16.msra.mxu2 %v563_v9  ;;  %v555_v24 = vld [vmem:[%s821_s0 + $0x20] sm:$0xff]  ;;  %v557_v25 = vld [vmem:[%s821_s0 + $0x30] sm:$0xff]  ;;  %v302_v28 = vld [vmem:[%s823_s2 + $0x78] sm:$0xff] }
  0x10   :  { %625 = vmatpush.bf16.msra.mxu3 %v563_v9  ;;  %v301_v27 = vld [vmem:[%s823_s2 + $0x70] sm:$0xff]  ;;  %v552_v29 = vld [vmem:[%s821_s0 + $0x8] sm:$0xff]  ;;  %v554_v30 = vld [vmem:[%s821_s0 + $0x18] sm:$0xff] }
  0x11   :  { %v556_v31 = vld [vmem:[%s821_s0 + $0x28] sm:$0xff]  ;;  %v558_v32 = vld [vmem:[%s821_s0 + $0x38] sm:$0xff]  ;;  %v800_v46 = vld [vmem:[%s824_s3] ss:$0 sm:$0xff]  ;;  %s673_s0 = smov [#allocation3]  }
  0x12   :  { %335 = vperm.xlu0 %642, %v293_v12   ;;  %191 = vmatpush.bf16.msra.mxu0 %v562_v11  ;;  %s471_s3 = sshll.u32 %s673_s0, 4  ;;  %s472_s3 = int_to_ptr.vmem [resolvable:$true] %s471_s3 }
  0x13   :  { %626 = vmatpush.bf16.msra.mxu1 %v562_v11  ;;  %627 = vmatpush.bf16.msra.mxu2 %v562_v11 }
  0x14   :  { %628 = vmatpush.bf16.msra.mxu3 %v562_v11  ;;  %340 = vperm.xlu1 %643, %v294_v13  }
  0x16   :  { %192 = vmatpush.bf16.msra.mxu0 %v561_v14  ;;  %345 = vperm.xlu2 %644, %v295_v15  }
  0x17   :  { %629 = vmatpush.bf16.msra.mxu1 %v561_v14  ;;  %630 = vmatpush.bf16.msra.mxu2 %v561_v14 }
  0x18   :  { %631 = vmatpush.bf16.msra.mxu3 %v561_v14 }
  0x1a   :  { %350 = vperm.xlu0 %642, %v296_v17   ;;  %193 = vmatpush.bf16.msra.mxu0 %v560_v16 }
  0x1b   :  { %632 = vmatpush.bf16.msra.mxu1 %v560_v16  ;;  %633 = vmatpush.bf16.msra.mxu2 %v560_v16 }
  0x1c   :  { %634 = vmatpush.bf16.msra.mxu3 %v560_v16  ;;  %355 = vperm.xlu1 %643, %v297_v18  }
  0x1e   :  { %194 = vmatpush.bf16.msra.mxu0 %v559_v19  ;;  %360 = vperm.xlu2 %644, %v298_v21  }
  0x1f   :  { %635 = vmatpush.bf16.msra.mxu1 %v559_v19  ;;  %636 = vmatpush.bf16.msra.mxu2 %v559_v19 }
  0x20   :  { %637 = vmatpush.bf16.msra.mxu3 %v559_v19 }
  0x21   :  { %195 = vmatmul.bf16.vlgmr.msra.gmra.mxu0 %v551_v20 }
  0x22   :  { %365 = vperm.xlu0 %642, %v299_v23   ;;  %205 = vmatmul.bf16.vlgmr.msra.gmra.mxu1 %v553_v22 }
  0x23   :  { %215 = vmatmul.bf16.vlgmr.msra.gmra.mxu2 %v555_v24  ;;  %225 = vmatmul.bf16.vlgmr.msra.gmra.mxu3 %v557_v25 }
  0x24   :  { %370 = vperm.xlu1 %643, %v300_v26  }
  0x26   :  { %375 = vperm.xlu2 %644, %v301_v27  }
  0x2a   :  { %380 = vperm.xlu0 %642, %v302_v28  }
  0x31   :  { %200 = vmatmul.bf16.gmra.mxu0 %v552_v29 }
  0x32   :  { %210 = vmatmul.bf16.gmra.mxu1 %v554_v30 }
  0x33   :  { %220 = vmatmul.bf16.gmra.mxu2 %v556_v31  ;;  %230 = vmatmul.bf16.gmra.mxu3 %v558_v32 }
  0x60   :  { %v326_v37 = vpop.permute.xlu2 %325 }
  0x68   :  { %v331_v40 = vpop.permute.xlu2 %330 }
  0x70   :  { %v346_v48 = vpop.permute.xlu2 %345 }
  0x74   :  { %v306_v33 = vpop.permute.xlu0 %305 }
  0x76   :  { %v316_v34 = vpop.permute.xlu1 %315 }
  0x78   :  { %v361_v13 = vpop.permute.xlu2 %360 }
  0x7c   :  { %v311_v35 = vpop.permute.xlu0 %310 }
  0x7e   :  { %v321_v36 = vpop.permute.xlu1 %320 }
  0x80   :  { %v376_v32 = vpop.permute.xlu2 %375 }
  0x84   :  { %v336_v38 = vpop.permute.xlu0 %335 }
  0x86   :  { %v341_v39 = vpop.permute.xlu1 %340 }
  0x8c   :  { %v351_v43 = vpop.permute.xlu0 %350 }
  0x8e   :  { %v356_v44 = vpop.permute.xlu1 %355 }
  0x94   :  { %v366_v57 = vpop.permute.xlu0 %365 }
  0x96   :  { %v371_v2 = vpop.permute.xlu1 %370 }
  0x9e   :  { %v196_v41 = vpop.f32.mrf.mxu0 }
  0x9f   :  { %v206_v42 = vpop.f32.mrf.mxu1  ;;  %v383_v45 = vmul.f32 %v306_v33, %v196_v41 }
  0xa0   :  { %v387_v47 = vmul.f32 %v326_v37, %v206_v42 }
  0xa1   :  { %v403_v53 = vadd.f32 %v800_v46, %v383_v45 }
  0xa2   :  { %v407_v54 = vadd.f32 %v800_v46, %v387_v47 }
  0xa3   :  { %v419_v62 = vmax.f32 %v403_v53, 0.0 }
  0xa4   :  { %v423_v63 = vmax.f32 %v407_v54, 0.0 }
  0xa6   :  { %v216_v49 = vpop.f32.mrf.mxu2  ;;  %v226_v50 = vpop.f32.mrf.mxu3 }
  0xa7   :  { %v198_v51 = vpop.f32.mrf.mxu0  ;;  %v208_v52 = vpop.f32.mrf.mxu1  ;;  %v391_v60 = vmul.f32 %v346_v48, %v216_v49  ;;  %v395_v61 = vmul.f32 %v366_v57, %v226_v50 }
  0xa8   :  { %v384_v55 = vmul.f32 %v311_v35, %v198_v51  ;;  %v388_v56 = vmul.f32 %v331_v40, %v208_v52 }
  0xa9   :  { %v411_v7 = vadd.f32 %v800_v46, %v391_v60  ;;  %v415_v8 = vadd.f32 %v800_v46, %v395_v61 }
  0xaa   :  { %v404_v58 = vadd.f32 %v800_v46, %v384_v55  ;;  %v408_v59 = vadd.f32 %v800_v46, %v388_v56 }
  0xab   :  { %v427_v16 = vmax.f32 %v411_v7, 0.0  ;;  %v431_v17 = vmax.f32 %v415_v8, 0.0 }
  0xac   :  { %v420_v0 = vmax.f32 %v404_v58, 0.0  ;;  %v424_v1 = vmax.f32 %v408_v59, 0.0 }
  0xae   :  { %v570_v3 = vpack.c.bf16 %v420_v0, %v419_v62  ;;  %v580_v4 = vpack.c.bf16 %v424_v1, %v423_v63  ;;  %v218_v5 = vpop.f32.mrf.mxu2  ;;  %v228_v6 = vpop.f32.mrf.mxu3 }
  0xaf   :  { %v392_v9 = vmul.f32 %v351_v43, %v218_v5  ;;  %v396_v10 = vmul.f32 %v371_v2, %v228_v6  ;;  %v201_v11 = vpop.f32.mrf.mxu0  ;;  %v211_v12 = vpop.f32.mrf.mxu1 }
  0xb0   :  { %571 = vst [vmem:[#allocation3] sm:$0xff] %v570_v3   ;;  %v385_v20 = vmul.f32 %v316_v34, %v201_v11  ;;  %v389_v21 = vmul.f32 %v336_v38, %v211_v12  ;;  %v381_v43 = vpop.permute.xlu0 %380 }
  0xb1   :  { %608 = vst [vmem:[#allocation3 + $0x10] sm:$0xff] %v580_v4   ;;  %v412_v14 = vadd.f32 %v800_v46, %v392_v9  ;;  %v416_v15 = vadd.f32 %v800_v46, %v396_v10 }
  0xb2   :  { %v405_v28 = vadd.f32 %v800_v46, %v385_v20  ;;  %v409_v29 = vadd.f32 %v800_v46, %v389_v21 }
  0xb3   :  { %v428_v18 = vmax.f32 %v412_v14, 0.0  ;;  %v432_v19 = vmax.f32 %v416_v15, 0.0 }
  0xb4   :  { %v421_v38 = vmax.f32 %v405_v28, 0.0  ;;  %v425_v40 = vmax.f32 %v409_v29, 0.0 }
  0xb5   :  { %v590_v22 = vpack.c.bf16 %v428_v18, %v427_v16  ;;  %v600_v23 = vpack.c.bf16 %v432_v19, %v431_v17 }
  0xb6   :  { %v221_v24 = vpop.f32.mrf.mxu2  ;;  %v231_v25 = vpop.f32.mrf.mxu3 }
  0xb7   :  { %610 = vst [vmem:[#allocation3 + $0x20] sm:$0xff] %v590_v22   ;;  %v203_v26 = vpop.f32.mrf.mxu0  ;;  %v213_v27 = vpop.f32.mrf.mxu1  ;;  %v393_v35 = vmul.f32 %v356_v44, %v221_v24  ;;  %v397_v37 = vmul.f32 %v376_v32, %v231_v25 }
  0xb8   :  { %612 = vst [vmem:[#allocation3 + $0x30] sm:$0xff] %v600_v23   ;;  %v386_v30 = vmul.f32 %v321_v36, %v203_v26  ;;  %v390_v31 = vmul.f32 %v341_v39, %v213_v27 }
  0xb9   :  { %v413_v50 = vadd.f32 %v800_v46, %v393_v35  ;;  %v417_v36 = vadd.f32 %v800_v46, %v397_v37 }
  0xba   :  { %v406_v33 = vadd.f32 %v800_v46, %v386_v30  ;;  %v410_v34 = vadd.f32 %v800_v46, %v390_v31 }
  0xbb   :  { %v429_v53 = vmax.f32 %v413_v50, 0.0  ;;  %v433_v54 = vmax.f32 %v417_v36, 0.0 }
  0xbc   :  { %v422_v41 = vmax.f32 %v406_v33, 0.0  ;;  %v426_v42 = vmax.f32 %v410_v34, 0.0 }
  0xbe   :  { %v575_v45 = vpack.c.bf16 %v422_v41, %v421_v38  ;;  %v585_v47 = vpack.c.bf16 %v426_v42, %v425_v40  ;;  %v223_v48 = vpop.f32.mrf.mxu2  ;;  %v233_v49 = vpop.f32.mrf.mxu3 }
  0xbf   :  { %v394_v39 = vmul.f32 %v361_v13, %v223_v48  ;;  %v398_v51 = vmul.f32 %v381_v43, %v233_v49 }
  0xc0   :  { %607 = vst [vmem:[#allocation3 + $0x8] sm:$0xff] %v575_v45  }
  0xc1   :  { %609 = vst [vmem:[#allocation3 + $0x18] sm:$0xff] %v585_v47   ;;  %v414_v44 = vadd.f32 %v800_v46, %v394_v39  ;;  %v418_v52 = vadd.f32 %v800_v46, %v398_v51 }
  0xc3   :  { %v430_v55 = vmax.f32 %v414_v44, 0.0  ;;  %v434_v56 = vmax.f32 %v418_v52, 0.0 }
  0xc5   :  { %v595_v57 = vpack.c.bf16 %v430_v55, %v429_v53  ;;  %v605_v58 = vpack.c.bf16 %v434_v56, %v433_v54 }
  0xc7   :  { %611 = vst [vmem:[#allocation3 + $0x28] sm:$0xff] %v595_v57  }
  0xc8   :  { %613 = vst [vmem:[#allocation3 + $0x38] sm:$0xff] %v605_v58  }
  0xc9   :  { %479 = dma.vmem_to_hbm [thread:$0]  %s472_s3, 1024, %s474_s29, [#allocation4], %s674_s30, %s674_s30, %s675_s5  }
  0xca   :  { %670 = dma.done.wait [#allocation4], 1024  }
  0xcb   :  { %671 = vsyncadd [#allocation4], 4294966272 }
  0xcc   :  { %484 = vsyncpa [#allocation4], 1 }

</bundles_post_ra>
